<compile_context>
chip_gen: v7x
topology: tpu7x:2x2x1
jax: 0.10.0
libtpu: 0.0.40
codegen_flags: <defaults>
</compile_context>

<pallas_src>
from functools import partial

import jax
import jax.numpy as jnp
from jax.experimental import pallas as pl
from jax.experimental.pallas import tpu as pltpu


# ---------------------------------------------------------------------------
# Hyperparameters (small but consistent with the module's __init__ logic).
# ---------------------------------------------------------------------------
LAYERS = 2
BLOCKS = 2
DILATION_CH = 8
RESIDUAL_CH = 8
SKIP_CH = 16
CLASSES = 8
OUTPUT_LENGTH = 4
KERNEL_SIZE = 2
BATCH = 2


def build_dilations(layers, blocks, kernel_size):
    """Mirrors Wavenet_hx.__init__ dilation schedule / receptive field."""
    dilations = []
    receptive_field = 1
    for _ in range(blocks):
        additional_scope = kernel_size - 1
        new_dilation = 1
        for _ in range(layers):
            dilations.append(new_dilation)
            receptive_field += additional_scope
            additional_scope *= 2
            new_dilation *= 2
    return dilations, receptive_field


# ---------------------------------------------------------------------------
# Packed weight slab layout (row offsets, all multiples of 8).
# Slab shape: (total_rows, 128) float32, lane-dense.
#   S   : (zc rows)  block-diag [start_w.T | start_cond_w.T]
#   per layer i:
#     AB : (fgc rows) fused k=2 taps + cond.  Columns 0:zc act on the rolled
#          state zr, columns zc:2*zc act on the un-rolled state z (tap1+cond).
#     C  : (rsc rows) fused [residual ; 0 (h pass-through) ; skip] projection.
#   E1  : (skp rows)  end_conv_1 weight with bias folded into column `skp`.
#   E2  : (8 rows)    end_conv_2 weight with bias folded into column `skp`.
# ---------------------------------------------------------------------------
def _slab_layout(num_layers):
    res, dil, skp, cls = RESIDUAL_CH, DILATION_CH, SKIP_CH, CLASSES
    zc = res + dil           # rows of state z = [x | h]            (16)
    fgc = 2 * dil            # rows of fused filter|gate pre-act    (16)
    rsc = res + dil + skp    # rows of fused residual|0|skip proj   (32)
    width = 128              # lane-dense slab (one full lane tile)
    stride = fgc + rsc       # rows per layer block                 (48)
    kaug = skp + 8           # augmented K for bias-folded end convs
    lay = {"zc": zc, "fgc": fgc, "rsc": rsc, "width": width,
           "stride": stride, "kaug": kaug}
    lay["S"] = 0
    lay["layer0"] = zc
    base = zc + num_layers * stride
    lay["e1"] = base
    lay["e2"] = base + skp
    lay["total"] = lay["e2"] + ((cls + 7) // 8) * 8
    return lay


def pack_weights(P, num_layers):
    """Pack all weights/biases into one (rows, 128) f32 slab.

    This is plain-JAX setup-time glue: call it ONCE when parameters are
    created/updated, NOT inside the per-step forward path.
    """
    res, dil, skp, cls = RESIDUAL_CH, DILATION_CH, SKIP_CH, CLASSES
    lay = _slab_layout(num_layers)
    zc, fgc, rsc, W = lay["zc"], lay["fgc"], lay["rsc"], lay["width"]
    f32 = jnp.float32

    blocks = []
    # Start convs (fused block-diagonal 1x1): maps [x | h] -> [res | dil].
    S = jnp.zeros((zc, W), f32)
    S = S.at[0:res, 0:cls].set(P["start_w"].T)
    S = S.at[res:res + dil, cls:2 * cls].set(P["start_cond_w"].T)
    blocks.append(S)

    for i in range(num_layers):
        AB = jnp.zeros((fgc, W), f32)
        # Columns 0:zc -> rolled state zr (k=2 tap 0, x rows only).
        AB = AB.at[0:dil, 0:res].set(P["fw"][i, 0].T)
        AB = AB.at[dil:2 * dil, 0:res].set(P["gw"][i, 0].T)
        # Columns zc:2*zc -> un-rolled state z (tap 1 on x rows + cond on h rows).
        AB = AB.at[0:dil, zc:zc + res].set(P["fw"][i, 1].T)
        AB = AB.at[dil:2 * dil, zc:zc + res].set(P["gw"][i, 1].T)
        AB = AB.at[0:dil, zc + res:zc + res + dil].set(P["fcw"][i].T)
        AB = AB.at[dil:2 * dil, zc + res:zc + res + dil].set(P["gcw"][i].T)
        # Fused projection: [resw ; 0 (h pass-through) ; skipw].
        C = jnp.zeros((rsc, W), f32)
        C = C.at[0:res, 0:dil].set(P["resw"][i].T)
        C = C.at[res + dil:res + dil + skp, 0:dil].set(P["skipw"][i].T)
        blocks += [AB, C]

    # End convs with biases folded into an extra weight column (column `skp`);
    # the kernel appends a constant ones block to the activations instead of
    # doing a runtime lane-broadcast bias add.
    e2rows = ((cls + 7) // 8) * 8
    E1 = jnp.zeros((skp, W), f32)
    E1 = E1.at[:, 0:skp].set(P["e1w"].T)
    E1 = E1.at[:, skp:skp + 1].set(P["e1b"].reshape(skp, 1))
    E2 = jnp.zeros((e2rows, W), f32)
    E2 = E2.at[0:cls, 0:skp].set(P["e2w"].T)
    E2 = E2.at[0:cls, skp:skp + 1].set(P["e2b"].reshape(cls, 1))
    blocks += [E1, E2]

    slab = jnp.concatenate(blocks, axis=0).astype(f32)
    assert slab.shape == (lay["total"], W), slab.shape
    return slab


# ---------------------------------------------------------------------------
# Pallas kernel: whole forward (all batches, all layers) in one invocation.
# Activations are right-aligned along the lane axis; garbage in early lanes is
# never read for valid outputs (only the last OUTPUT_LENGTH lanes per batch
# segment are valid, and their dependency chain stays inside the segment
# because sum(dilations) == receptive_field - 1).
# ---------------------------------------------------------------------------
def _make_kernel(dilations):
    res, dil, skp, cls = RESIDUAL_CH, DILATION_CH, SKIP_CH, CLASSES
    lay = _slab_layout(len(dilations))
    zc, fgc, rsc, kaug = lay["zc"], lay["fgc"], lay["rsc"], lay["kaug"]

    def kernel(xh_ref, w_ref, o_ref):
        f32 = jnp.float32
        nl = xh_ref.shape[1]
        xh = xh_ref[...]                                            # (2*cls, nl)

        # Fused start convs: z = [start_conv(x) ; start_cond_conv(h)].
        z = jnp.dot(w_ref[0:zc, 0:2 * cls], xh, preferred_element_type=f32)
        skip = jnp.zeros((skp, nl), f32)
        ones8 = jnp.ones((8, nl), f32)   # constant block for bias folding

        # Python unroll is fine at 4 layers (good LLO visibility).
        # TODO(synk): at realistic depths (30+ layers) switch to lax.fori_loop
        # with pl.ds(base, rows) offsets wrapped in pl.multiple_of(base, 8).
        for i, d in enumerate(dilations):
            base = lay["layer0"] + i * lay["stride"]
            w_ab = w_ref[base:base + fgc, 0:2 * zc]                 # taps fused
            w_c = w_ref[base + fgc:base + fgc + rsc, 0:dil]         # res|0|skip

            # zr[:, k] = z[:, k-d]; circular wrap only touches cropped lanes.
            zr = pltpu.roll(z, d, axis=1)
            zz = jnp.concatenate([zr, z], axis=0)                   # (2*zc, nl)
            fg = jnp.dot(w_ab, zz, preferred_element_type=f32)      # one K=32 MXU op
            xg = jnp.tanh(fg[0:dil]) * jax.nn.sigmoid(fg[dil:2 * dil])
            rs = jnp.dot(w_c, xg, preferred_element_type=f32)       # (rsc, nl)
            z = z + rs[0:zc]              # residual add; h rows get +0 (unchanged)
            skip = skip + rs[zc:zc + skp]

        # End convs; biases folded into the matmul via the ones block.
        out = jax.nn.relu(skip)
        out = jax.nn.relu(
            jnp.dot(w_ref[lay["e1"]:lay["e1"] + skp, 0:kaug],
                    jnp.concatenate([out, ones8], axis=0),
                    preferred_element_type=f32))
        out = jnp.dot(w_ref[lay["e2"]:lay["e2"] + cls, 0:kaug],
                      jnp.concatenate([out, ones8], axis=0),
                      preferred_element_type=f32)
        o_ref[...] = out.astype(o_ref.dtype)                        # (cls, nl)

    return kernel


# ---------------------------------------------------------------------------
# Wrapper: NCL in, NCL out.  The pre-packed weight slab is passed in (built
# once at setup time); all remaining glue (concat/transpose/pad/crop) is tiny
# and fused by XLA under jit.  A single no-grid pallas_call does all compute.
#
# Scaling notes (not needed at this toy size):
#  * for non-toy N*L: pad the lane axis to multiples of 256, cast xh/slab to
#    bf16 (keep preferred_element_type=f32), and add a lane-axis grid with
#    dimension_semantics=("parallel",) so v7x's two TensorCores split the
#    work — each lane block then needs a sum(dilations)-lane halo because
#    pltpu.roll cannot see the neighbouring block,
#  * budget the whole-problem-resident state (~6 live f32 arrays of 16 rows)
#    against v7x's 64 MiB VMEM (vs 128 MiB on v5e/v6e) before scaling NL.
# ---------------------------------------------------------------------------
@partial(jax.jit, static_argnames=("dilations",))
def wavenet_hx_forward(h_ncl, x_ncl, slab, dilations):
    N, cls, L = x_ncl.shape
    assert cls == CLASSES
    L_out = L - sum(d * (KERNEL_SIZE - 1) for d in dilations)
    NL = N * L
    nl_pad = max(128, ((NL + 127) // 128) * 128)   # lane-dense, full vregs

    # (N, C, L) x2 -> (2*C, N*L); lane index = n*L + t, pad lanes to nl_pad.
    xh = jnp.concatenate([x_ncl, h_ncl], axis=1)                    # (N, 2C, L)
    xh = jnp.transpose(xh, (1, 0, 2)).reshape(2 * cls, NL).astype(jnp.float32)
    xh = jnp.pad(xh, ((0, 0), (0, nl_pad - NL)))

    kernel = _make_kernel(tuple(dilations))
    vmem = pl.BlockSpec(memory_space=pltpu.MemorySpace.VMEM)
    out_flat = pl.pallas_call(
        kernel,
        out_shape=jax.ShapeDtypeStruct((cls, nl_pad), jnp.float32),
        in_specs=[vmem, vmem],
        out_specs=vmem,
    )(xh, slab)

    # Crop valid lanes, unflatten batch, keep last L_out time steps.
    out = out_flat[:, :NL].reshape(cls, N, L)
    out = jnp.transpose(out, (1, 0, 2))[:, :, L - L_out:]           # (N, cls, L_out)
    return out


# ---------------------------------------------------------------------------
# Pure-JAX reference (same math as the PyTorch module) for verification.
# ---------------------------------------------------------------------------
def reference_forward(h_ncl, x_ncl, P, dilations):
    N, classes, L = x_ncl.shape
    x = jnp.einsum("ncl,co->nlo", x_ncl, P["start_w"])
    h = jnp.einsum("ncl,co->nlo", h_ncl, P["start_cond_w"])
    skip = None
    Lcur = L
    for i, d in enumerate(dilations):
        Lo = Lcur - d * (KERNEL_SIZE - 1)
        residual = x
        f = (jnp.einsum("nlc,co->nlo", x[:, :Lo], P["fw"][i, 0])
             + jnp.einsum("nlc,co->nlo", x[:, d:Lcur], P["fw"][i, 1]))
        f = f + jnp.einsum("nlc,co->nlo", h[:, L - Lo:], P["fcw"][i])
        f = jnp.tanh(f)
        g = (jnp.einsum("nlc,co->nlo", x[:, :Lo], P["gw"][i, 0])
             + jnp.einsum("nlc,co->nlo", x[:, d:Lcur], P["gw"][i, 1]))
        g = g + jnp.einsum("nlc,co->nlo", h[:, L - Lo:], P["gcw"][i])
        g = jax.nn.sigmoid(g)
        xg = f * g
        s = jnp.einsum("nlc,co->nlo", xg, P["skipw"][i])
        skip = s if skip is None else s + skip[:, -Lo:]
        x = jnp.einsum("nlc,co->nlo", xg, P["resw"][i]) + residual[:, d:Lcur]
        Lcur = Lo
    out = jax.nn.relu(skip)
    out = jax.nn.relu(jnp.einsum("nlc,co->nlo", out, P["e1w"]) + P["e1b"])
    out = jnp.einsum("nlc,co->nlo", out, P["e2w"]) + P["e2b"]
    return jnp.transpose(out, (0, 2, 1))


# ---------------------------------------------------------------------------
# Deterministic parameter init (Conv1d weights stored as (C_in, C_out) per tap;
# the packing glue re-orients them for the channels-on-sublanes kernel layout).
# ---------------------------------------------------------------------------
def init_params(key, num_layers):
    ks = jax.random.split(key, 12)
    s = 0.2
    return {
        "start_w":      s * jax.random.normal(ks[0],  (CLASSES, RESIDUAL_CH), jnp.float32),
        "start_cond_w": s * jax.random.normal(ks[1],  (CLASSES, DILATION_CH), jnp.float32),
        "fw":           s * jax.random.normal(ks[2],  (num_layers, 2, RESIDUAL_CH, DILATION_CH), jnp.float32),
        "gw":           s * jax.random.normal(ks[3],  (num_layers, 2, RESIDUAL_CH, DILATION_CH), jnp.float32),
        "fcw":          s * jax.random.normal(ks[4],  (num_layers, DILATION_CH, DILATION_CH), jnp.float32),
        "gcw":          s * jax.random.normal(ks[5],  (num_layers, DILATION_CH, DILATION_CH), jnp.float32),
        "resw":         s * jax.random.normal(ks[6],  (num_layers, DILATION_CH, RESIDUAL_CH), jnp.float32),
        "skipw":        s * jax.random.normal(ks[7],  (num_layers, DILATION_CH, SKIP_CH), jnp.float32),
        "e1w":          s * jax.random.normal(ks[8],  (SKIP_CH, SKIP_CH), jnp.float32),
        "e1b":          s * jax.random.normal(ks[9],  (1, SKIP_CH), jnp.float32),
        "e2w":          s * jax.random.normal(ks[10], (SKIP_CH, CLASSES), jnp.float32),
        "e2b":          s * jax.random.normal(ks[11], (1, CLASSES), jnp.float32),
    }


if __name__ == "__main__":
    # TODO(synk): only the 'normal' forward mode is implemented; the stateful
    # 'save'/'step' caching modes have no clean single-kernel equivalent here.
    dilations, receptive_field = build_dilations(LAYERS, BLOCKS, KERNEL_SIZE)
    dilations = tuple(dilations)
    input_size = receptive_field + OUTPUT_LENGTH - 1  # = 10

    key = jax.random.PRNGKey(0)
    k_h, k_x, k_p = jax.random.split(key, 3)
    # PyTorch-convention inputs: (N, classes, L_in)
    h_in = jax.random.normal(k_h, (BATCH, CLASSES, input_size), jnp.float32)
    x_in = jax.random.normal(k_x, (BATCH, CLASSES, input_size), jnp.float32)
    params = init_params(k_p, LAYERS * BLOCKS)

    # Pack all weights into the slab ONCE at setup time (not per forward).
    slab = jax.block_until_ready(pack_weights(params, len(dilations)))

    out = wavenet_hx_forward(h_in, x_in, slab, dilations)
    out = jax.block_until_ready(out)

    ref = reference_forward(h_in, x_in, params, dilations)
    ref = jax.block_until_ready(ref)

    assert out.shape == (BATCH, CLASSES, OUTPUT_LENGTH), out.shape
    assert jnp.allclose(out, ref, atol=1e-4, rtol=1e-4), (
        float(jnp.max(jnp.abs(out - ref))))

    print("KERNEL_OK")
</pallas_src>

<mosaic_0001>
module attributes {stable_mosaic.version = 11 : i64} {
  func.func @kernel(%arg0: memref<16x128xf32, #tpu.memory_space<vmem>>, %arg1: memref<232x128xf32, #tpu.memory_space<vmem>>, %arg2: memref<8x128xf32, #tpu.memory_space<vmem>>) attributes {dimension_semantics = [], scalar_prefetch = 0 : i64, scratch_operands = 0 : i64, tpu.core_type = #tpu.core_type<tc>} {
    %c0 = arith.constant 0 : index
    %c0_0 = arith.constant 0 : index
    %0 = vector.load %arg0[%c0, %c0_0] : memref<16x128xf32, #tpu.memory_space<vmem>>, vector<16x128xf32>
    %c0_1 = arith.constant 0 : index
    %c0_2 = arith.constant 0 : index
    %1 = vector.load %arg1[%c0_1, %c0_2] : memref<232x128xf32, #tpu.memory_space<vmem>>, vector<16x16xf32>
    %cst = arith.constant dense<0.000000e+00> : vector<16x128xf32>
    %2 = tpu.matmul %1, %0, %cst {dimension_numbers = #tpu.dot_dimension_numbers<[1], [0], [0], [1], [0, 0, 1, 1], [], []>} : vector<16x16xf32>, vector<16x128xf32>, vector<16x128xf32> -> vector<16x128xf32>
    %cst_3 = arith.constant 0.000000e+00 : f32
    %3 = vector.broadcast %cst_3 : f32 to vector<16x128xf32>
    %cst_4 = arith.constant 1.000000e+00 : f32
    %4 = vector.broadcast %cst_4 : f32 to vector<8x128xf32>
    %c16 = arith.constant 16 : index
    %c0_5 = arith.constant 0 : index
    %5 = vector.load %arg1[%c16, %c0_5] : memref<232x128xf32, #tpu.memory_space<vmem>>, vector<16x32xf32>
    %c32 = arith.constant 32 : index
    %c0_6 = arith.constant 0 : index
    %6 = vector.load %arg1[%c32, %c0_6] : memref<232x128xf32, #tpu.memory_space<vmem>>, vector<32x8xf32>
    %c1_i32 = arith.constant 1 : i32
    %7 = tpu.dynamic_rotate %2 by %c1_i32 dim 1 : vector<16x128xf32>, i32 -> vector<16x128xf32>
    %8 = tpu.concatenate %7, %2 in 0 : vector<16x128xf32>, vector<16x128xf32> -> vector<32x128xf32>
    %cst_7 = arith.constant dense<0.000000e+00> : vector<16x128xf32>
    %9 = tpu.matmul %5, %8, %cst_7 {dimension_numbers = #tpu.dot_dimension_numbers<[1], [0], [0], [1], [0, 0, 1, 1], [], []>} : vector<16x32xf32>, vector<32x128xf32>, vector<16x128xf32> -> vector<16x128xf32>
    %10 = vector.extract_strided_slice %9 {offsets = [0, 0], sizes = [8, 128], strides = [1, 1]} : vector<16x128xf32> to vector<8x128xf32>
    %11 = math.tanh %10 : vector<8x128xf32>
    %12 = vector.extract_strided_slice %9 {offsets = [8, 0], sizes = [8, 128], strides = [1, 1]} : vector<16x128xf32> to vector<8x128xf32>
    %13 = arith.negf %12 : vector<8x128xf32>
    %14 = math.exp %13 : vector<8x128xf32>
    %cst_8 = arith.constant 1.000000e+00 : f32
    %15 = vector.broadcast %cst_8 : f32 to vector<8x128xf32>
    %16 = arith.addf %15, %14 : vector<8x128xf32>
    %17 = arith.divf %15, %16 : vector<8x128xf32>
    %18 = arith.mulf %11, %17 : vector<8x128xf32>
    %cst_9 = arith.constant dense<0.000000e+00> : vector<32x128xf32>
    %19 = tpu.matmul %6, %18, %cst_9 {dimension_numbers = #tpu.dot_dimension_numbers<[1], [0], [0], [1], [0, 0, 1, 1], [], []>} : vector<32x8xf32>, vector<8x128xf32>, vector<32x128xf32> -> vector<32x128xf32>
    %20 = vector.extract_strided_slice %19 {offsets = [0, 0], sizes = [16, 128], strides = [1, 1]} : vector<32x128xf32> to vector<16x128xf32>
    %21 = arith.addf %2, %20 : vector<16x128xf32>
    %22 = vector.extract_strided_slice %19 {offsets = [16, 0], sizes = [16, 128], strides = [1, 1]} : vector<32x128xf32> to vector<16x128xf32>
    %23 = arith.addf %3, %22 : vector<16x128xf32>
    %c64 = arith.constant 64 : index
    %c0_10 = arith.constant 0 : index
    %24 = vector.load %arg1[%c64, %c0_10] : memref<232x128xf32, #tpu.memory_space<vmem>>, vector<16x32xf32>
    %c80 = arith.constant 80 : index
    %c0_11 = arith.constant 0 : index
    %25 = vector.load %arg1[%c80, %c0_11] : memref<232x128xf32, #tpu.memory_space<vmem>>, vector<32x8xf32>
    %c2_i32 = arith.constant 2 : i32
    %26 = tpu.dynamic_rotate %21 by %c2_i32 dim 1 : vector<16x128xf32>, i32 -> vector<16x128xf32>
    %27 = tpu.concatenate %26, %21 in 0 : vector<16x128xf32>, vector<16x128xf32> -> vector<32x128xf32>
    %cst_12 = arith.constant dense<0.000000e+00> : vector<16x128xf32>
    %28 = tpu.matmul %24, %27, %cst_12 {dimension_numbers = #tpu.dot_dimension_numbers<[1], [0], [0], [1], [0, 0, 1, 1], [], []>} : vector<16x32xf32>, vector<32x128xf32>, vector<16x128xf32> -> vector<16x128xf32>
    %29 = vector.extract_strided_slice %28 {offsets = [0, 0], sizes = [8, 128], strides = [1, 1]} : vector<16x128xf32> to vector<8x128xf32>
    %30 = math.tanh %29 : vector<8x128xf32>
    %31 = vector.extract_strided_slice %28 {offsets = [8, 0], sizes = [8, 128], strides = [1, 1]} : vector<16x128xf32> to vector<8x128xf32>
    %32 = arith.negf %31 : vector<8x128xf32>
    %33 = math.exp %32 : vector<8x128xf32>
    %cst_13 = arith.constant 1.000000e+00 : f32
    %34 = vector.broadcast %cst_13 : f32 to vector<8x128xf32>
    %35 = arith.addf %34, %33 : vector<8x128xf32>
    %36 = arith.divf %34, %35 : vector<8x128xf32>
    %37 = arith.mulf %30, %36 : vector<8x128xf32>
    %cst_14 = arith.constant dense<0.000000e+00> : vector<32x128xf32>
    %38 = tpu.matmul %25, %37, %cst_14 {dimension_numbers = #tpu.dot_dimension_numbers<[1], [0], [0], [1], [0, 0, 1, 1], [], []>} : vector<32x8xf32>, vector<8x128xf32>, vector<32x128xf32> -> vector<32x128xf32>
    %39 = vector.extract_strided_slice %38 {offsets = [0, 0], sizes = [16, 128], strides = [1, 1]} : vector<32x128xf32> to vector<16x128xf32>
    %40 = arith.addf %21, %39 : vector<16x128xf32>
    %41 = vector.extract_strided_slice %38 {offsets = [16, 0], sizes = [16, 128], strides = [1, 1]} : vector<32x128xf32> to vector<16x128xf32>
    %42 = arith.addf %23, %41 : vector<16x128xf32>
    %c112 = arith.constant 112 : index
    %c0_15 = arith.constant 0 : index
    %43 = vector.load %arg1[%c112, %c0_15] : memref<232x128xf32, #tpu.memory_space<vmem>>, vector<16x32xf32>
    %c128 = arith.constant 128 : index
    %c0_16 = arith.constant 0 : index
    %44 = vector.load %arg1[%c128, %c0_16] : memref<232x128xf32, #tpu.memory_space<vmem>>, vector<32x8xf32>
    %c1_i32_17 = arith.constant 1 : i32
    %45 = tpu.dynamic_rotate %40 by %c1_i32_17 dim 1 : vector<16x128xf32>, i32 -> vector<16x128xf32>
    %46 = tpu.concatenate %45, %40 in 0 : vector<16x128xf32>, vector<16x128xf32> -> vector<32x128xf32>
    %cst_18 = arith.constant dense<0.000000e+00> : vector<16x128xf32>
    %47 = tpu.matmul %43, %46, %cst_18 {dimension_numbers = #tpu.dot_dimension_numbers<[1], [0], [0], [1], [0, 0, 1, 1], [], []>} : vector<16x32xf32>, vector<32x128xf32>, vector<16x128xf32> -> vector<16x128xf32>
    %48 = vector.extract_strided_slice %47 {offsets = [0, 0], sizes = [8, 128], strides = [1, 1]} : vector<16x128xf32> to vector<8x128xf32>
    %49 = math.tanh %48 : vector<8x128xf32>
    %50 = vector.extract_strided_slice %47 {offsets = [8, 0], sizes = [8, 128], strides = [1, 1]} : vector<16x128xf32> to vector<8x128xf32>
    %51 = arith.negf %50 : vector<8x128xf32>
    %52 = math.exp %51 : vector<8x128xf32>
    %cst_19 = arith.constant 1.000000e+00 : f32
    %53 = vector.broadcast %cst_19 : f32 to vector<8x128xf32>
    %54 = arith.addf %53, %52 : vector<8x128xf32>
    %55 = arith.divf %53, %54 : vector<8x128xf32>
    %56 = arith.mulf %49, %55 : vector<8x128xf32>
    %cst_20 = arith.constant dense<0.000000e+00> : vector<32x128xf32>
    %57 = tpu.matmul %44, %56, %cst_20 {dimension_numbers = #tpu.dot_dimension_numbers<[1], [0], [0], [1], [0, 0, 1, 1], [], []>} : vector<32x8xf32>, vector<8x128xf32>, vector<32x128xf32> -> vector<32x128xf32>
    %58 = vector.extract_strided_slice %57 {offsets = [0, 0], sizes = [16, 128], strides = [1, 1]} : vector<32x128xf32> to vector<16x128xf32>
    %59 = arith.addf %40, %58 : vector<16x128xf32>
    %60 = vector.extract_strided_slice %57 {offsets = [16, 0], sizes = [16, 128], strides = [1, 1]} : vector<32x128xf32> to vector<16x128xf32>
    %61 = arith.addf %42, %60 : vector<16x128xf32>
    %c160 = arith.constant 160 : index
    %c0_21 = arith.constant 0 : index
    %62 = vector.load %arg1[%c160, %c0_21] : memref<232x128xf32, #tpu.memory_space<vmem>>, vector<16x32xf32>
    %c176 = arith.constant 176 : index
    %c0_22 = arith.constant 0 : index
    %63 = vector.load %arg1[%c176, %c0_22] : memref<232x128xf32, #tpu.memory_space<vmem>>, vector<32x8xf32>
    %c2_i32_23 = arith.constant 2 : i32
    %64 = tpu.dynamic_rotate %59 by %c2_i32_23 dim 1 : vector<16x128xf32>, i32 -> vector<16x128xf32>
    %65 = tpu.concatenate %64, %59 in 0 : vector<16x128xf32>, vector<16x128xf32> -> vector<32x128xf32>
    %cst_24 = arith.constant dense<0.000000e+00> : vector<16x128xf32>
    %66 = tpu.matmul %62, %65, %cst_24 {dimension_numbers = #tpu.dot_dimension_numbers<[1], [0], [0], [1], [0, 0, 1, 1], [], []>} : vector<16x32xf32>, vector<32x128xf32>, vector<16x128xf32> -> vector<16x128xf32>
    %67 = vector.extract_strided_slice %66 {offsets = [0, 0], sizes = [8, 128], strides = [1, 1]} : vector<16x128xf32> to vector<8x128xf32>
    %68 = math.tanh %67 : vector<8x128xf32>
    %69 = vector.extract_strided_slice %66 {offsets = [8, 0], sizes = [8, 128], strides = [1, 1]} : vector<16x128xf32> to vector<8x128xf32>
    %70 = arith.negf %69 : vector<8x128xf32>
    %71 = math.exp %70 : vector<8x128xf32>
    %cst_25 = arith.constant 1.000000e+00 : f32
    %72 = vector.broadcast %cst_25 : f32 to vector<8x128xf32>
    %73 = arith.addf %72, %71 : vector<8x128xf32>
    %74 = arith.divf %72, %73 : vector<8x128xf32>
    %75 = arith.mulf %68, %74 : vector<8x128xf32>
    %cst_26 = arith.constant dense<0.000000e+00> : vector<32x128xf32>
    %76 = tpu.matmul %63, %75, %cst_26 {dimension_numbers = #tpu.dot_dimension_numbers<[1], [0], [0], [1], [0, 0, 1, 1], [], []>} : vector<32x8xf32>, vector<8x128xf32>, vector<32x128xf32> -> vector<32x128xf32>
    %77 = vector.extract_strided_slice %76 {offsets = [16, 0], sizes = [16, 128], strides = [1, 1]} : vector<32x128xf32> to vector<16x128xf32>
    %78 = arith.addf %61, %77 : vector<16x128xf32>
    %cst_27 = arith.constant 0.000000e+00 : f32
    %79 = vector.broadcast %cst_27 : f32 to vector<16x128xf32>
    %80 = arith.maximumf %78, %79 : vector<16x128xf32>
    %c208 = arith.constant 208 : index
    %c0_28 = arith.constant 0 : index
    %81 = vector.load %arg1[%c208, %c0_28] : memref<232x128xf32, #tpu.memory_space<vmem>>, vector<16x24xf32>
    %82 = tpu.concatenate %80, %4 in 0 : vector<16x128xf32>, vector<8x128xf32> -> vector<24x128xf32>
    %cst_29 = arith.constant dense<0.000000e+00> : vector<16x128xf32>
    %83 = tpu.matmul %81, %82, %cst_29 {dimension_numbers = #tpu.dot_dimension_numbers<[1], [0], [0], [1], [0, 0, 1, 1], [], []>} : vector<16x24xf32>, vector<24x128xf32>, vector<16x128xf32> -> vector<16x128xf32>
    %cst_30 = arith.constant 0.000000e+00 : f32
    %84 = vector.broadcast %cst_30 : f32 to vector<16x128xf32>
    %85 = arith.maximumf %83, %84 : vector<16x128xf32>
    %c224 = arith.constant 224 : index
    %c0_31 = arith.constant 0 : index
    %86 = vector.load %arg1[%c224, %c0_31] : memref<232x128xf32, #tpu.memory_space<vmem>>, vector<8x24xf32>
    %87 = tpu.concatenate %85, %4 in 0 : vector<16x128xf32>, vector<8x128xf32> -> vector<24x128xf32>
    %cst_32 = arith.constant dense<0.000000e+00> : vector<8x128xf32>
    %88 = tpu.matmul %86, %87, %cst_32 {dimension_numbers = #tpu.dot_dimension_numbers<[1], [0], [0], [1], [0, 0, 1, 1], [], []>} : vector<8x24xf32>, vector<24x128xf32>, vector<8x128xf32> -> vector<8x128xf32>
    %c0_33 = arith.constant 0 : index
    %c0_34 = arith.constant 0 : index
    %89 = vector.load %arg2[%c0_33, %c0_34] : memref<8x128xf32, #tpu.memory_space<vmem>>, vector<8x128xf32>
    tpu.vector_store %arg2[%c0_33, %c0_34], %88 {strides = array<i32>} : memref<8x128xf32, #tpu.memory_space<vmem>>, vector<8x128xf32>,
    return
  }
}

</mosaic_0001>

<bundles_post_ra>
// kernel: wavenet_hx_forward.1
= control target key start
LH: loop header
LB: loop body
LE: loop exit
PB: predicated region body
PF: predicated region fallthrough
CT: control target
= control target key end

     0   :  { %7 = vsyncpa [#allocation3], 0  ;;  %s1394_s9 = smov [#allocation2]   ;;  %s1470_s0 = inlined_call_operand.vmem [shape: f32[16,128], index: 0, kind: input, shape index: {}]   ;;  %s1471_s1 = inlined_call_operand.hbm [shape: f32[232,128], index: 1, kind: input, shape index: {}]   ;;  %s1472_s2 = inlined_call_operand.vmem [shape: f32[8,128], index: 2, kind: output, shape index: {}]  }
   0x1   :  { %s15_s10 = sshll.u32 %s1394_s9, 4  ;;  %s1370_s13 = scalar_lea.hbm %s1471_s1, 3712  ;;  %s16_s10 = int_to_ptr.vmem [resolvable:$true] %s15_s10 }
   0x2   :  { %p1371_p0 = scmp.ne.s32.totalorder %s1471_s1, %s1370_s13  ;;  %p1374_p1 = scmp.lt.u32.totalorder %s1370_s13, %s1471_s1 }
   0x4   :  { %p1376_p2 = pnand %p1374_p1, %p1371_p0 }
   0x6   :  { %1379 = shalt.err (!%p1376_p2)
}
   0x7   :  { %s1380_s18 = scalar_lea.vmem %s16_s10, 3712  ;;  %p1385_p4 = scmp.lt.s32.totalorder %s16_s10, %s16_s10 }
   0x8   :  { %p1381_p3 = scmp.ne.s32.totalorder %s16_s10, %s1380_s18  ;;  %p1386_p5 = scmp.lt.s32.totalorder %s1380_s18, %s1380_s18 }
   0xa   :  { %p1387_p6 = por %p1386_p5, %p1385_p4 }
   0xc   :  { %p1388_p7 = pnand %p1387_p6, %p1381_p3 }
   0xe   :  { %1391 = shalt.err (!%p1388_p7)
}
   0xf   :  { %s1395_s19 = smov 128   ;;  %s1396_s20 = smov 8  }
  0x10   :  { %21 = dma.hbm_to_vmem [thread:$0]  %s1471_s1, 3712, %s16_s10, [#allocation3], %s1395_s19, %s1395_s19, %s1396_s20  }
  0x11   :  { %1392 = dma.done.wait [#allocation3], 3712  }
  0x12   :  { %1393 = vsyncadd [#allocation3], 4294963584  ;;  %vm29_vm0 = vcmask 130048   ;;  %v25_v0 = vld [vmem:[%s1470_s0] sm:$0xff]  ;;  %v26_v1 = vld [vmem:[%s1470_s0 + $0x8] sm:$0xff]  ;;  %vm121_vm1 = vcmask 261120  }
  0x13   :  { %v27_v2 = vld [vmem:[#allocation2] sm:$0xff]  ;;  %v1268_v3 = vpack.c.bf16 %v26_v1, %v25_v0  ;;  %v28_v4 = vld [vmem:[#allocation2 + $0x8] sm:$0xff]  ;;  %v111_v6 = vld [vmem:[#allocation2 + $0x10] sm:$0xff]  ;;  %s1397_s1 = smov 1   ;;  %vm211_vm2 = vcmask 64512   ;;  %s1398_s0 = smov 2  }
  0x14   :  { %1171 = vmatprep.mubr.msk.f32.mxu0 %vm29_vm0, %v27_v2  ;;  %1182 = vmatprep.mubr.msk.f32.mxu1 %vm121_vm1, %v111_v6  ;;  %v112_v14 = vld [vmem:[#allocation2 + $0x18] sm:$0xff]  ;;  %v113_v15 = vld [vmem:[#allocation2 + $0x20] sm:$0xff]  ;;  %v114_v24 = vld [vmem:[#allocation2 + $0x28] sm:$0xff]  ;;  %vm913_vm3 = vcmask 195584   ;;  %vm1401_vm4 = vmmov 0  }
  0x15   :  { %1269 = vmatprep.subr.bf16.mxu0 %v1268_v3  ;;  %v115_v25 = vld [vmem:[#allocation2 + $0x30] sm:$0xff]  ;;  %v116_v26 = vld [vmem:[#allocation2 + $0x38] sm:$0xff]  ;;  %v313_v31 = vld [vmem:[#allocation2 + $0x40] sm:$0xff] }
  0x16   :  { %1271 = vmatpush3.bf16.msra.mxu0 %v1268_v3  ;;  %v314_v38 = vld [vmem:[#allocation2 + $0x48] sm:$0xff]  ;;  %v315_v39 = vld [vmem:[#allocation2 + $0x50] sm:$0xff]  ;;  %v316_v48 = vld [vmem:[#allocation2 + $0x58] sm:$0xff] }
  0x17   :  { %v513_v53 = vld [vmem:[#allocation2 + $0x70] sm:$0xff]  ;;  %v514_v60 = vld [vmem:[#allocation2 + $0x78] sm:$0xff]  ;;  %v317_v61 = vld [vmem:[#allocation2 + $0x60] sm:$0xff] }
  0x18   :  { %v318_v62 = vld [vmem:[#allocation2 + $0x68] sm:$0xff]  ;;  %v515_v63 = vld [vmem:[#allocation2 + $0x80] sm:$0xff] }
  0x19   :  { %1172 = vmatmul.mubr.msk.f32.vlgmr.msra.gmra.mrb[0].mxu0 %vm29_vm0, %v28_v4 }
  0x1a   :  { %1187 = vmatprep.mubr.msk.f32.mxu0 %vm211_vm2, %v113_v15 }
  0xec   :  { %v1173_v5 = vpop.f32.mrb[0].mxu0 }
  0xed   :  { %v102_v7 = vpop.f32.mrb[1].mxu0 }
  0xee   :  { %v1276_v8 = vpack.c.bf16 %v1173_v5, %v102_v7  ;;  %v1326_v9 = vpack.i.bf16 %v1173_v5, %v102_v7 }
  0xf0   :  { %1327 = vrot.lane.b32.xlu0 %v1326_v9, %s1397_s1 }
 0x162   :  { %v1328_v10 = vpop.permute.xlu0 %1327 }
 0x163   :  { %v1330_v11 = vunpack.i.h.bf16 %v1328_v10  ;;  %v1329_v12 = vunpack.i.l.bf16 %v1328_v10 }
 0x165   :  { %v1272_v13 = vpack.c.bf16 %v1330_v11, %v1329_v12 }
 0x167   :  { %1273 = vmatprep.subr.bf16.mxu1 %v1272_v13 }
 0x168   :  { %1275 = vmatpush3.bf16.msra.mxu1 %v1272_v13  ;;  %v713_v13 = vld [vmem:[#allocation2 + $0xa0] sm:$0xff] }
 0x169   :  { %1277 = vmatprep.subr.bf16.mxu1 %v1276_v8 }
 0x16c   :  { %1279 = vmatpush3.bf16.msra.mxu1 %v1276_v8  ;;  %v516_v8 = vld [vmem:[#allocation2 + $0x88] sm:$0xff] }
 0x16f   :  { %1183 = vmatmul.mubr.msk.f32.vlgmr.msra.gmra.mrb[0].mxu1 %vm121_vm1, %v112_v14 }
 0x170   :  { %1220 = vmatprep.mubr.msk.f32.mxu1 %vm121_vm1, %v513_v53 }
 0x242   :  { %v1184_v16 = vpop.f32.mrb[0].mxu1 }
 0x243   :  { %v1081_v17 = vmul.f32 -1.442695, %v1184_v16  ;;  %v194_v18 = vpop.f32.mrb[1].mxu1 }
 0x245   :  { %1346 = vpow2.f32 %v1081_v17 }
 0x246   :  { %1348 = vtanh.f32 %v194_v18 }
 0x24f   :  { %v1347_v19 = vpop.eup %1346 }
 0x250   :  { %v207_v20 = vadd.f32 1.0, %v1347_v19  ;;  %v1349_v21 = vpop.eup %1348 }
 0x252   :  { %1350 = vrcp.f32 %v207_v20  ;;  %v714_v20 = vld [vmem:[#allocation2 + $0xa8] sm:$0xff] }
 0x25c   :  { %v1351_v22 = vpop.eup %1350 }
 0x25d   :  { %v210_v23 = vmul.f32 %v1351_v22, %v1349_v21  ;;  %v517_v21 = vld [vmem:[#allocation2 + $0x90] sm:$0xff]  ;;  %v518_v22 = vld [vmem:[#allocation2 + $0x98] sm:$0xff] }
 0x25f   :  { %1185 = vmatprep.subr.mxu0 %v210_v23 }
 0x260   :  { %1186 = vmatpush3.msra.mxu0 %v210_v23  ;;  %v715_v23 = vld [vmem:[#allocation2 + $0xb0] sm:$0xff] }
 0x261   :  { %1188 = vmatmul.mubr.msk.f32.vlgmr.msra.gmra.mrb[2].mxu0 %vm211_vm2, %v114_v24 }
 0x262   :  { %1190 = vmatprep.mubr.msk.f32.mxu0 %vm211_vm2, %v115_v25 }
 0x265   :  { %1191 = vmatmul.mubr.msk.f32.gmra.mrb[4].mxu0 %vm211_vm2, %v116_v26 }
 0x266   :  { %1201 = vmatprep.mubr.msk.f32.mxu0 %vm121_vm1, %v313_v31 }
 0x334   :  { %v1189_v27 = vpop.f32.mrb[2].mxu0 }
 0x335   :  { %v310_v28 = vadd.f32 %v1189_v27, %v1173_v5  ;;  %v290_v29 = vpop.f32.mrb[3].mxu0 }
 0x336   :  { %v309_v30 = vadd.f32 %v290_v29, %v102_v7 }
 0x338   :  { %v1331_v32 = vpack.i.bf16 %v310_v28, %v309_v30  ;;  %v1284_v37 = vpack.c.bf16 %v310_v28, %v309_v30 }
 0x33a   :  { %1332 = vrot.lane.b32.xlu0 %v1331_v32, %s1398_s0  ;;  %v716_v32 = vld [vmem:[#allocation2 + $0xb8] sm:$0xff] }
 0x3ac   :  { %v1333_v33 = vpop.permute.xlu0 %1332 }
 0x3ad   :  { %v1335_v34 = vunpack.i.h.bf16 %v1333_v33  ;;  %v1334_v35 = vunpack.i.l.bf16 %v1333_v33  ;;  %v717_v33 = vld [vmem:[#allocation2 + $0xc0] sm:$0xff] }
 0x3af   :  { %v1280_v36 = vpack.c.bf16 %v1335_v34, %v1334_v35  ;;  %v718_v34 = vld [vmem:[#allocation2 + $0xc8] sm:$0xff]  ;;  %v911_v35 = vld [vmem:[#allocation2 + $0xd0] sm:$0xff] }
 0x3b1   :  { %1281 = vmatprep.subr.bf16.mxu0 %v1280_v36 }
 0x3b2   :  { %1283 = vmatpush3.bf16.msra.mxu0 %v1280_v36 }
 0x3b3   :  { %1285 = vmatprep.subr.bf16.mxu0 %v1284_v37 }
 0x3b6   :  { %1287 = vmatpush3.bf16.msra.mxu0 %v1284_v37 }
 0x3b9   :  { %1202 = vmatmul.mubr.msk.f32.vlgmr.msra.gmra.mrb[6].mxu0 %vm121_vm1, %v314_v38 }
 0x3ba   :  { %1206 = vmatprep.mubr.msk.f32.mxu0 %vm211_vm2, %v315_v39 }
 0x48c   :  { %v1203_v40 = vpop.f32.mrb[6].mxu0 }
 0x48d   :  { %v1088_v41 = vmul.f32 -1.442695, %v1203_v40  ;;  %v395_v42 = vpop.f32.mrb[7].mxu0 }
 0x48f   :  { %1352 = vpow2.f32 %v1088_v41 }
 0x490   :  { %1354 = vtanh.f32 %v395_v42 }
 0x499   :  { %v1353_v43 = vpop.eup %1352 }
 0x49a   :  { %v408_v44 = vadd.f32 1.0, %v1353_v43  ;;  %v1355_v45 = vpop.eup %1354  ;;  %v1399_v43 = vmov 1.0  }
 0x49c   :  { %1356 = vrcp.f32 %v408_v44  ;;  %v912_v44 = vld [vmem:[#allocation2 + $0xd8] sm:$0xff] }
 0x4a6   :  { %v1357_v46 = vpop.eup %1356 }
 0x4a7   :  { %v411_v47 = vmul.f32 %v1357_v46, %v1355_v45  ;;  %v1400_v45 = vmov 0.0|0.0   ;;  %v1402_v46 = vmov 0.0  }
 0x4a9   :  { %1204 = vmatprep.subr.mxu0 %v411_v47 }
 0x4aa   :  { %1205 = vmatpush3.msra.mxu0 %v411_v47 }
 0x4ab   :  { %1207 = vmatmul.mubr.msk.f32.vlgmr.msra.gmra.mrb[8].mxu0 %vm211_vm2, %v316_v48 }
 0x4ac   :  { %1209 = vmatprep.mubr.msk.f32.mxu0 %vm211_vm2, %v317_v61 }
 0x4af   :  { %1210 = vmatmul.mubr.msk.f32.gmra.mrb[4].mxu0 %vm211_vm2, %v318_v62 }
 0x4b0   :  { %1225 = vmatprep.mubr.msk.f32.mxu0 %vm211_vm2, %v515_v63 }
 0x57e   :  { %v1208_v49 = vpop.f32.mrb[8].mxu0 }
 0x57f   :  { %v510_v50 = vadd.f32 %v1208_v49, %v310_v28  ;;  %v490_v51 = vpop.f32.mrb[9].mxu0 }
 0x580   :  { %v509_v52 = vadd.f32 %v490_v51, %v309_v30 }
 0x582   :  { %v1336_v54 = vpack.i.bf16 %v510_v50, %v509_v52  ;;  %v1292_v59 = vpack.c.bf16 %v510_v50, %v509_v52 }
 0x584   :  { %1337 = vrot.lane.b32.xlu1 %v1336_v54, %s1397_s1 }
 0x5f6   :  { %v1338_v55 = vpop.permute.xlu1 %1337 }
 0x5f7   :  { %v1340_v56 = vunpack.i.h.bf16 %v1338_v55  ;;  %v1339_v57 = vunpack.i.l.bf16 %v1338_v55 }
 0x5f9   :  { %v1288_v58 = vpack.c.bf16 %v1340_v56, %v1339_v57 }
 0x5fb   :  { %1289 = vmatprep.subr.bf16.mxu1 %v1288_v58 }
 0x5fc   :  { %1291 = vmatpush3.bf16.msra.mxu1 %v1288_v58 }
 0x5fd   :  { %1293 = vmatprep.subr.bf16.mxu1 %v1292_v59 }
 0x600   :  { %1295 = vmatpush3.bf16.msra.mxu1 %v1292_v59 }
 0x603   :  { %1221 = vmatmul.mubr.msk.f32.vlgmr.msra.gmra.mrb[2].mxu1 %vm121_vm1, %v514_v60 }
 0x604   :  { %1239 = vmatprep.mubr.msk.f32.mxu1 %vm121_vm1, %v713_v13 }
 0x6d6   :  { %v1222_v0 = vpop.f32.mrb[2].mxu1 }
 0x6d7   :  { %v1095_v1 = vmul.f32 -1.442695, %v1222_v0  ;;  %v595_v2 = vpop.f32.mrb[3].mxu1 }
 0x6d9   :  { %1358 = vpow2.f32 %v1095_v1 }
 0x6da   :  { %1360 = vtanh.f32 %v595_v2 }
 0x6e3   :  { %v1359_v3 = vpop.eup %1358 }
 0x6e4   :  { %v608_v4 = vadd.f32 1.0, %v1359_v3  ;;  %v1361_v5 = vpop.eup %1360 }
 0x6e6   :  { %1362 = vrcp.f32 %v608_v4 }
 0x6f0   :  { %v1363_v6 = vpop.eup %1362 }
 0x6f1   :  { %v611_v7 = vmul.f32 %v1363_v6, %v1361_v5 }
 0x6f3   :  { %1223 = vmatprep.subr.mxu0 %v611_v7 }
 0x6f4   :  { %1224 = vmatpush3.msra.mxu0 %v611_v7 }
 0x6f5   :  { %1226 = vmatmul.mubr.msk.f32.vlgmr.msra.gmra.mrb[10].mxu0 %vm211_vm2, %v516_v8 }
 0x6f6   :  { %1228 = vmatprep.mubr.msk.f32.mxu0 %vm211_vm2, %v517_v21 }
 0x6f9   :  { %1229 = vmatmul.mubr.msk.f32.gmra.mrb[4].mxu0 %vm211_vm2, %v518_v22 }
 0x6fa   :  { %1244 = vmatprep.mubr.msk.f32.mxu0 %vm211_vm2, %v715_v23 }
 0x7c8   :  { %v1227_v9 = vpop.f32.mrb[10].mxu0 }
 0x7c9   :  { %v710_v10 = vadd.f32 %v1227_v9, %v510_v50  ;;  %v690_v11 = vpop.f32.mrb[11].mxu0 }
 0x7ca   :  { %v709_v12 = vadd.f32 %v690_v11, %v509_v52  ;;  %v997_v52 = vld [vmem:[#allocation2 + $0xe0] sm:$0xff] }
 0x7cc   :  { %v1341_v14 = vpack.i.bf16 %v710_v10, %v709_v12  ;;  %v1300_v15 = vpack.c.bf16 %v710_v10, %v709_v12 }
 0x7ce   :  { %1342 = vrot.lane.b32.xlu1 %v1341_v14, %s1398_s0 }
 0x840   :  { %v1343_v16 = vpop.permute.xlu1 %1342 }
 0x841   :  { %v1345_v17 = vunpack.i.h.bf16 %v1343_v16  ;;  %v1344_v18 = vunpack.i.l.bf16 %v1343_v16 }
 0x843   :  { %v1296_v19 = vpack.c.bf16 %v1345_v17, %v1344_v18 }
 0x845   :  { %1297 = vmatprep.subr.bf16.mxu1 %v1296_v19 }
 0x846   :  { %1299 = vmatpush3.bf16.msra.mxu1 %v1296_v19 }
 0x847   :  { %1301 = vmatprep.subr.bf16.mxu1 %v1300_v15 }
 0x84a   :  { %1303 = vmatpush3.bf16.msra.mxu1 %v1300_v15 }
 0x84d   :  { %1240 = vmatmul.mubr.msk.f32.vlgmr.msra.gmra.mrb[4].mxu1 %vm121_vm1, %v714_v20 }
 0x84e   :  { %1256 = vmatprep.mubr.msk.f32.mxu1 %vm913_vm3, %v911_v35 }
 0x920   :  { %v1241_v24 = vpop.f32.mrb[4].mxu1 }
 0x921   :  { %v1102_v25 = vmul.f32 -1.442695, %v1241_v24  ;;  %v795_v26 = vpop.f32.mrb[5].mxu1 }
 0x923   :  { %1364 = vpow2.f32 %v1102_v25 }
 0x924   :  { %1366 = vtanh.f32 %v795_v26 }
 0x92d   :  { %v1365_v27 = vpop.eup %1364 }
 0x92e   :  { %v808_v28 = vadd.f32 1.0, %v1365_v27  ;;  %v1367_v29 = vpop.eup %1366 }
 0x930   :  { %1368 = vrcp.f32 %v808_v28 }
 0x93a   :  { %v1369_v30 = vpop.eup %1368 }
 0x93b   :  { %v811_v31 = vmul.f32 %v1369_v30, %v1367_v29 }
 0x93d   :  { %1242 = vmatprep.subr.mxu0 %v811_v31 }
 0x93e   :  { %1243 = vmatpush3.msra.mxu0 %v811_v31 }
 0x93f   :  { %1245 = vmatmul.mubr.msk.f32.vlgmr.msra.gmra.mrb[12].mxu0 %vm211_vm2, %v716_v32 }
 0x940   :  { %1247 = vmatprep.mubr.msk.f32.mxu0 %vm211_vm2, %v717_v33 }
 0x943   :  { %1248 = vmatmul.mubr.msk.f32.gmra.mrb[4].mxu0 %vm211_vm2, %v718_v34 }
 0xa12   :  { %v1246_v36 = vpop.f32.mrb[12].mxu0 }
 0xa13   :  { %v890_v37 = vpop.f32.mrb[13].mxu0 }
 0xa16   :  { %v1249_v38 = vpop.f32.mrb[4].mxu0 }
 0xa17   :  { %v910_v39 = vmax.f32 %v1249_v38, 0.0  ;;  %v898_v40 = vpop.f32.mrb[5].mxu0 }
 0xa18   :  { %v909_v41 = vmax.f32 %v898_v40, 0.0 }
 0xa1a   :  { %v1304_v42 = vpack.c.bf16 %v910_v39, %v909_v41 }
 0xa1c   :  { %1305 = vmatprep.subr.bf16.mxu1 %v1304_v42 }
 0xa1d   :  { %1307 = vmatpush3.bf16.msra.mxu1 %v1304_v42 }
 0xa1e   :  { %1254 = vmatprep.subr.mxu1 %v1399_v43 }
 0xa21   :  { %1255 = vmatpush3.msra.mxu1 %v1399_v43 }
 0xa22   :  { %1257 = vmatmul.mubr.msk.f32.vlgmr.msra.gmra.mrb[6].mxu1 %vm913_vm3, %v912_v44  ;;  %1308 = vmatprep.subr.bf16.mxu1 %v1400_v45 }
 0xa23   :  { %1265 = vmatprep.mubr.msk.f32.mxu1 %vm1401_vm4, %v1402_v46 }
 0xaf5   :  { %v1258_v47 = vpop.f32.mrb[6].mxu1 }
 0xaf6   :  { %v996_v48 = vmax.f32 %v1258_v47, 0.0  ;;  %v986_v49 = vpop.f32.mrb[7].mxu1 }
 0xaf7   :  { %v995_v50 = vmax.f32 %v986_v49, 0.0 }
 0xaf9   :  { %v1309_v51 = vpack.c.bf16 %v996_v48, %v995_v50 }
 0xafb   :  { %1310 = vmatpush3.bf16.msra.mxu1 %v1309_v51 }
 0xafc   :  { %1263 = vmatprep.subr.mxu1 %v1402_v46 }
 0xaff   :  { %1264 = vmatpush3.msra.mxu1 %v1399_v43 }
 0xb00   :  { %1266 = vmatmul.mubr.msk.f32.vlgmr.msra.gmra.mrb[8].mxu1 %vm913_vm3, %v997_v52 }
 0xbd3   :  { %v1067_v53 = vpop.f32.mrb[8].mxu1 }
 0xbd4   :  { %1071 = vst [vmem:[%s1472_s2] sm:$0xff] %v1067_v53  ;;  %v1267_v54 = vpop.f32.mrb[9].mxu1 }
 0xbd5   :  { %1076 = vsyncpa [#allocation3], 1 }

</bundles_post_ra>
